<compile_context>
chip_gen: v7x
topology: tpu7x:2x2x1
jax: 0.10.0
libtpu: 0.0.40
codegen_flags: <defaults>
</compile_context>

<pallas_src>
import functools
import math

import jax
import jax.numpy as jnp
from jax.experimental import pallas as pl
from jax.experimental.pallas import tpu as pltpu

LN_EPS = 1e-5      # RoBERTa layer_norm_eps
LANE_OUT = 256     # classifier-output lane padding (full MXU width on v6e/v7x)


def _round_up(x, m):
    return (x + m - 1) // m * m


def _head_kernel(x_ref, wd_ref, bd_ref, g_ref, beta_ref, wc_ref, bc_ref, out_ref):
    """dense -> exact-gelu -> layernorm -> classifier, for one tile of rows."""
    # Cast activations to bf16 in-kernel (native MXU input); f32 accumulation.
    x = x_ref[...].astype(jnp.bfloat16)

    # lm_head.dense: Linear(H, H)
    h = jnp.dot(x, wd_ref[...], preferred_element_type=jnp.float32)
    h = h + bd_ref[...]

    # exact GELU (erf-based, matches torch.nn.functional.gelu default), f32
    # TODO(synk): if bundle dumps show VALU as the binding slot, evaluate the
    # erf polynomial in bf16 (v6e/v7x) or switch to tanh-approx GELU.
    h = 0.5 * h * (1.0 + jax.lax.erf(h * (1.0 / math.sqrt(2.0))))

    # lm_head.layer_norm over the hidden (lane) axis, f32 statistics
    mean = jnp.mean(h, axis=-1, keepdims=True)
    cent = h - mean
    var = jnp.mean(cent * cent, axis=-1, keepdims=True)
    hn = cent * jax.lax.rsqrt(var + LN_EPS)
    hn = hn * g_ref[...] + beta_ref[...]

    # classifier: Linear(H, num_labels), lane-padded output
    logits = jnp.dot(hn.astype(jnp.bfloat16), wc_ref[...],
                     preferred_element_type=jnp.float32)
    out_ref[...] = (logits + bc_ref[...]).astype(out_ref.dtype)


def _pick_row_tile(M, row_tile):
    """Row tile: big enough to amortize step overhead, small enough that the
    parallel grid has >= 2 steps (v7x has 2 TensorCores sharing the axis)."""
    rt = min(row_tile, max(_round_up(M, 8), 8))
    while rt >= 512 and pl.cdiv(M, rt) < 2:
        rt //= 2
    return rt


@functools.partial(jax.jit, static_argnames=("row_tile", "single_buffer_weights"))
def _head_impl(last_hidden, params, row_tile, single_buffer_weights):
    B, S, H = last_hidden.shape
    L = params["wc"].shape[1]
    Lp = _round_up(L, LANE_OUT)        # lane-dense classifier output
    M = B * S
    rt = _pick_row_tile(M, row_tile)
    grid = (pl.cdiv(M, rt),)           # ragged last block handled by masking

    # Activations stay f32 (metadata-only reshape; bf16 cast happens in-kernel).
    x = last_hidden.reshape(M, H)
    wd = params["wd"].astype(jnp.bfloat16)
    bd = params["bd"].astype(jnp.float32)
    gamma = params["gamma"].astype(jnp.float32)
    beta = params["beta"].astype(jnp.float32)
    wc = params["wc"].astype(jnp.bfloat16)
    bc = params["bc"].astype(jnp.float32)
    if Lp != L:
        wc = jnp.pad(wc, ((0, 0), (0, Lp - L)))
        bc = jnp.pad(bc, ((0, 0), (0, Lp - L)))

    # Weight / bias blocks never change across the grid -> single-buffer them.
    wmode = pl.Buffered(1) if single_buffer_weights else None

    # VMEM budget from the actual footprint (+ headroom for f32 intermediates).
    wbuf = 1 if single_buffer_weights else 2
    vmem = (rt * H * 4 * 2                     # x blocks, f32, double-buffered
            + rt * Lp * 4 * 2                  # out blocks, f32, double-buffered
            + H * H * 2 * wbuf                 # dense weight, bf16
            + H * Lp * 2 * wbuf                # classifier weight, bf16
            + 8 * (3 * H + Lp) * 4 * wbuf      # (1,*) operands, sublane-padded
            + rt * H * 4 * 3)                  # in-kernel f32/bf16 intermediates
    vmem = min(_round_up(vmem + (8 << 20), 1 << 20), 64 << 20)

    cost = pl.CostEstimate(
        flops=2 * M * H * (H + Lp),
        transcendentals=M * H,
        bytes_accessed=(x.size * 4 + wd.size * 2 + wc.size * 2
                        + (bd.size + gamma.size + beta.size + bc.size) * 4
                        + M * Lp * 4),
    )

    logits = pl.pallas_call(
        _head_kernel,
        out_shape=jax.ShapeDtypeStruct((M, Lp), jnp.float32),
        grid_spec=pltpu.PrefetchScalarGridSpec(
            num_scalar_prefetch=0,
            grid=grid,
            in_specs=[
                pl.BlockSpec((rt, H), lambda i: (i, 0)),                       # x rows (f32)
                pl.BlockSpec((H, H), lambda i: (0, 0), pipeline_mode=wmode),   # dense W (in,out)
                pl.BlockSpec((1, H), lambda i: (0, 0), pipeline_mode=wmode),   # dense bias
                pl.BlockSpec((1, H), lambda i: (0, 0), pipeline_mode=wmode),   # LN gamma
                pl.BlockSpec((1, H), lambda i: (0, 0), pipeline_mode=wmode),   # LN beta
                pl.BlockSpec((H, Lp), lambda i: (0, 0), pipeline_mode=wmode),  # classifier W (padded)
                pl.BlockSpec((1, Lp), lambda i: (0, 0), pipeline_mode=wmode),  # classifier bias (padded)
            ],
            out_specs=pl.BlockSpec((rt, Lp), lambda i: (i, 0)),
        ),
        compiler_params=pltpu.CompilerParams(
            dimension_semantics=("parallel",),
            vmem_limit_bytes=vmem,
        ),
        cost_estimate=cost,
    )(x, wd, bd, gamma, beta, wc, bc)

    return logits[:, :L].reshape(B, S, L)


def mymodel_head(last_hidden, params, *, row_tile=512):
    """last_hidden: (B, S, H) float32.  Returns logits (B, S, num_labels)."""
    try:
        return _head_impl(last_hidden, params, row_tile, True)
    except Exception:
        # Fallback: this JAX version rejected pl.Buffered(1) -> use default
        # double-buffering for the constant weight blocks (previously validated).
        return _head_impl(last_hidden, params, row_tile, False)


def _reference_head(last_hidden, params):
    """Pure-JAX reference with identical numerics (bf16 matmul operands, f32 acc)."""
    B, S, H = last_hidden.shape
    x = last_hidden.reshape(-1, H).astype(jnp.bfloat16)
    wd = params["wd"].astype(jnp.bfloat16)
    wc = params["wc"].astype(jnp.bfloat16)
    h = jnp.dot(x, wd, preferred_element_type=jnp.float32) + params["bd"][0]
    h = 0.5 * h * (1.0 + jax.lax.erf(h / jnp.sqrt(2.0)))
    mean = jnp.mean(h, axis=-1, keepdims=True)
    var = jnp.mean((h - mean) ** 2, axis=-1, keepdims=True)
    hn = (h - mean) * jax.lax.rsqrt(var + LN_EPS)
    hn = hn * params["gamma"][0] + params["beta"][0]
    logits = (jnp.dot(hn.astype(jnp.bfloat16), wc,
                      preferred_element_type=jnp.float32) + params["bc"][0])
    return logits.reshape(B, S, -1)


def init_params(key, hidden_size, num_labels):
    k1, k2, k3, k4 = jax.random.split(key, 4)
    scale_d = 1.0 / math.sqrt(hidden_size)
    return {
        # stored as (in, out) so the kernel does x @ W
        "wd": jax.random.uniform(k1, (hidden_size, hidden_size), jnp.float32,
                                 -scale_d, scale_d),
        "bd": jax.random.uniform(k2, (1, hidden_size), jnp.float32,
                                 -scale_d, scale_d),
        "gamma": jnp.ones((1, hidden_size), jnp.float32),
        "beta": jnp.zeros((1, hidden_size), jnp.float32),
        "wc": jax.random.uniform(k3, (hidden_size, num_labels), jnp.float32,
                                 -scale_d, scale_d),
        "bc": jax.random.uniform(k4, (1, num_labels), jnp.float32,
                                 -scale_d, scale_d),
    }


if __name__ == "__main__":
    key = jax.random.PRNGKey(0)

    # Primary small-shape test (block == full array escape hatch).
    B, S, H, NUM_LABELS = 2, 8, 32, 4
    kx, kp, key = jax.random.split(key, 3)
    last_hidden = jax.random.normal(kx, (B, S, H), jnp.float32)   # stand-in for outputs[1][-1]
    params = init_params(kp, H, NUM_LABELS)

    logits = jax.block_until_ready(mymodel_head(last_hidden, params))
    ref = _reference_head(last_hidden, params)
    assert logits.shape == (B, S, NUM_LABELS)
    assert jnp.allclose(logits, ref, atol=1e-3, rtol=1e-3), "mismatch vs JAX reference (small)"

    # Secondary check: multi-step row grid with a ragged last block + lane padding.
    B2, S2, H2, L2 = 2, 520, 256, 4
    kx2, kp2 = jax.random.split(key)
    last_hidden2 = jax.random.normal(kx2, (B2, S2, H2), jnp.float32)
    params2 = init_params(kp2, H2, L2)

    logits2 = jax.block_until_ready(mymodel_head(last_hidden2, params2))
    ref2 = _reference_head(last_hidden2, params2)
    assert logits2.shape == (B2, S2, L2)
    assert jnp.allclose(logits2, ref2, atol=2e-2, rtol=2e-2), "mismatch vs JAX reference (tiled)"

    print("KERNEL_OK")
</pallas_src>

<mosaic_0001>
module attributes {stable_mosaic.version = 11 : i64} {
  func.func @_head_kernel(%arg0: i32, %arg1: memref<16x32xf32, #tpu.memory_space<vmem>>, %arg2: memref<32x32xbf16, #tpu.memory_space<vmem>>, %arg3: memref<1x32xf32, #tpu.memory_space<vmem>>, %arg4: memref<1x32xf32, #tpu.memory_space<vmem>>, %arg5: memref<1x32xf32, #tpu.memory_space<vmem>>, %arg6: memref<32x256xbf16, #tpu.memory_space<vmem>>, %arg7: memref<1x256xf32, #tpu.memory_space<vmem>>, %arg8: memref<16x256xf32, #tpu.memory_space<vmem>>) attributes {dimension_semantics = [#tpu.dimension_semantics<parallel>], iteration_bounds = array<i64: 1>, scalar_prefetch = 0 : i64, scratch_operands = 0 : i64, tpu.core_type = #tpu.core_type<tc>, window_params = [{transform_indices = @transform_0, window_bounds = array<i64: 16, 32>}, {pipeline_mode = #tpu.pipeline_mode<synchronous>, transform_indices = @transform_1, window_bounds = array<i64: 32, 32>}, {pipeline_mode = #tpu.pipeline_mode<synchronous>, transform_indices = @transform_2, window_bounds = array<i64: 1, 32>}, {pipeline_mode = #tpu.pipeline_mode<synchronous>, transform_indices = @transform_3, window_bounds = array<i64: 1, 32>}, {pipeline_mode = #tpu.pipeline_mode<synchronous>, transform_indices = @transform_4, window_bounds = array<i64: 1, 32>}, {pipeline_mode = #tpu.pipeline_mode<synchronous>, transform_indices = @transform_5, window_bounds = array<i64: 32, 256>}, {pipeline_mode = #tpu.pipeline_mode<synchronous>, transform_indices = @transform_6, window_bounds = array<i64: 1, 256>}, {transform_indices = @transform_7, window_bounds = array<i64: 16, 256>}]} {
    %c0 = arith.constant 0 : index
    %c0_0 = arith.constant 0 : index
    %0 = vector.load %arg1[%c0, %c0_0] : memref<16x32xf32, #tpu.memory_space<vmem>>, vector<16x32xf32>
    %1 = arith.truncf %0 : vector<16x32xf32> to vector<16x32xbf16>
    %c0_1 = arith.constant 0 : index
    %c0_2 = arith.constant 0 : index
    %2 = vector.load %arg2[%c0_1, %c0_2] : memref<32x32xbf16, #tpu.memory_space<vmem>>, vector<32x32xbf16>
    %cst = arith.constant dense<0.000000e+00> : vector<16x32xf32>
    %3 = tpu.matmul %1, %2, %cst {dimension_numbers = #tpu.dot_dimension_numbers<[1], [0], [0], [1], [0, 0, 1, 1], [], []>} : vector<16x32xbf16>, vector<32x32xbf16>, vector<16x32xf32> -> vector<16x32xf32>
    %c0_3 = arith.constant 0 : index
    %c0_4 = arith.constant 0 : index
    %4 = vector.load %arg3[%c0_3, %c0_4] : memref<1x32xf32, #tpu.memory_space<vmem>>, vector<1x32xf32>
    %5 = vector.broadcast %4 : vector<1x32xf32> to vector<16x32xf32>
    %6 = arith.addf %3, %5 : vector<16x32xf32>
    %cst_5 = arith.constant 5.000000e-01 : f32
    %7 = vector.broadcast %cst_5 : f32 to vector<16x32xf32>
    %8 = arith.mulf %7, %6 : vector<16x32xf32>
    %cst_6 = arith.constant 0.707106769 : f32
    %9 = vector.broadcast %cst_6 : f32 to vector<16x32xf32>
    %10 = arith.mulf %6, %9 : vector<16x32xf32>
    %11 = math.erf %10 : vector<16x32xf32>
    %cst_7 = arith.constant 1.000000e+00 : f32
    %12 = vector.broadcast %cst_7 : f32 to vector<16x32xf32>
    %13 = arith.addf %12, %11 : vector<16x32xf32>
    %14 = arith.mulf %8, %13 : vector<16x32xf32>
    %cst_8 = arith.constant dense<0.000000e+00> : vector<16xf32>
    %15 = vector.multi_reduction <add>, %14, %cst_8 [1] : vector<16x32xf32> to vector<16xf32>
    %16 = vector.shape_cast %15 : vector<16xf32> to vector<16x1xf32>
    %cst_9 = arith.constant 3.200000e+01 : f32
    %17 = vector.broadcast %cst_9 : f32 to vector<16x1xf32>
    %18 = arith.divf %16, %17 : vector<16x1xf32>
    %19 = vector.broadcast %18 : vector<16x1xf32> to vector<16x32xf32>
    %20 = arith.subf %14, %19 : vector<16x32xf32>
    %21 = arith.mulf %20, %20 : vector<16x32xf32>
    %cst_10 = arith.constant dense<0.000000e+00> : vector<16xf32>
    %22 = vector.multi_reduction <add>, %21, %cst_10 [1] : vector<16x32xf32> to vector<16xf32>
    %23 = vector.shape_cast %22 : vector<16xf32> to vector<16x1xf32>
    %cst_11 = arith.constant 3.200000e+01 : f32
    %24 = vector.broadcast %cst_11 : f32 to vector<16x1xf32>
    %25 = arith.divf %23, %24 : vector<16x1xf32>
    %cst_12 = arith.constant 9.99999974E-6 : f32
    %26 = vector.broadcast %cst_12 : f32 to vector<16x1xf32>
    %27 = arith.addf %25, %26 : vector<16x1xf32>
    %28 = math.rsqrt %27 : vector<16x1xf32>
    %29 = vector.broadcast %28 : vector<16x1xf32> to vector<16x32xf32>
    %30 = arith.mulf %20, %29 : vector<16x32xf32>
    %c0_13 = arith.constant 0 : index
    %c0_14 = arith.constant 0 : index
    %31 = vector.load %arg4[%c0_13, %c0_14] : memref<1x32xf32, #tpu.memory_space<vmem>>, vector<1x32xf32>
    %32 = vector.broadcast %31 : vector<1x32xf32> to vector<16x32xf32>
    %33 = arith.mulf %30, %32 : vector<16x32xf32>
    %c0_15 = arith.constant 0 : index
    %c0_16 = arith.constant 0 : index
    %34 = vector.load %arg5[%c0_15, %c0_16] : memref<1x32xf32, #tpu.memory_space<vmem>>, vector<1x32xf32>
    %35 = vector.broadcast %34 : vector<1x32xf32> to vector<16x32xf32>
    %36 = arith.addf %33, %35 : vector<16x32xf32>
    %37 = arith.truncf %36 : vector<16x32xf32> to vector<16x32xbf16>
    %c0_17 = arith.constant 0 : index
    %c0_18 = arith.constant 0 : index
    %38 = vector.load %arg6[%c0_17, %c0_18] : memref<32x256xbf16, #tpu.memory_space<vmem>>, vector<32x256xbf16>
    %cst_19 = arith.constant dense<0.000000e+00> : vector<16x256xf32>
    %39 = tpu.matmul %37, %38, %cst_19 {dimension_numbers = #tpu.dot_dimension_numbers<[1], [0], [0], [1], [0, 0, 1, 1], [], []>} : vector<16x32xbf16>, vector<32x256xbf16>, vector<16x256xf32> -> vector<16x256xf32>
    %c0_20 = arith.constant 0 : index
    %c0_21 = arith.constant 0 : index
    %40 = vector.load %arg7[%c0_20, %c0_21] : memref<1x256xf32, #tpu.memory_space<vmem>>, vector<1x256xf32>
    %41 = vector.broadcast %40 : vector<1x256xf32> to vector<16x256xf32>
    %42 = arith.addf %39, %41 : vector<16x256xf32>
    %c0_22 = arith.constant 0 : index
    %c0_23 = arith.constant 0 : index
    %43 = vector.load %arg8[%c0_22, %c0_23] : memref<16x256xf32, #tpu.memory_space<vmem>>, vector<16x256xf32>
    tpu.vector_store %arg8[%c0_22, %c0_23], %42 {strides = array<i32>} : memref<16x256xf32, #tpu.memory_space<vmem>>, vector<16x256xf32>,
    return
  }
  func.func @transform_0(%arg0: i32) -> (i32, i32) {
    %c0_i32 = arith.constant 0 : i32
    %c0_i32_0 = arith.constant 0 : i32
    return %arg0, %c0_i32 : i32, i32
  }
  func.func @transform_1(%arg0: i32) -> (i32, i32) {
    %c0_i32 = arith.constant 0 : i32
    %c0_i32_0 = arith.constant 0 : i32
    %c0_i32_1 = arith.constant 0 : i32
    return %c0_i32, %c0_i32_0 : i32, i32
  }
  func.func @transform_2(%arg0: i32) -> (i32, i32) {
    %c0_i32 = arith.constant 0 : i32
    %c0_i32_0 = arith.constant 0 : i32
    %c0_i32_1 = arith.constant 0 : i32
    return %c0_i32, %c0_i32_0 : i32, i32
  }
  func.func @transform_3(%arg0: i32) -> (i32, i32) {
    %c0_i32 = arith.constant 0 : i32
    %c0_i32_0 = arith.constant 0 : i32
    %c0_i32_1 = arith.constant 0 : i32
    return %c0_i32, %c0_i32_0 : i32, i32
  }
  func.func @transform_4(%arg0: i32) -> (i32, i32) {
    %c0_i32 = arith.constant 0 : i32
    %c0_i32_0 = arith.constant 0 : i32
    %c0_i32_1 = arith.constant 0 : i32
    return %c0_i32, %c0_i32_0 : i32, i32
  }
  func.func @transform_5(%arg0: i32) -> (i32, i32) {
    %c0_i32 = arith.constant 0 : i32
    %c0_i32_0 = arith.constant 0 : i32
    %c0_i32_1 = arith.constant 0 : i32
    return %c0_i32, %c0_i32_0 : i32, i32
  }
  func.func @transform_6(%arg0: i32) -> (i32, i32) {
    %c0_i32 = arith.constant 0 : i32
    %c0_i32_0 = arith.constant 0 : i32
    %c0_i32_1 = arith.constant 0 : i32
    return %c0_i32, %c0_i32_0 : i32, i32
  }
  func.func @transform_7(%arg0: i32) -> (i32, i32) {
    %c0_i32 = arith.constant 0 : i32
    %c0_i32_0 = arith.constant 0 : i32
    return %arg0, %c0_i32 : i32, i32
  }
}

module attributes {stable_mosaic.version = 11 : i64} {
  func.func @_head_kernel(%arg0: i32, %arg1: memref<16x32xf32, #tpu.memory_space<vmem>>, %arg2: memref<32x32xbf16, #tpu.memory_space<vmem>>, %arg3: memref<1x32xf32, #tpu.memory_space<vmem>>, %arg4: memref<1x32xf32, #tpu.memory_space<vmem>>, %arg5: memref<1x32xf32, #tpu.memory_space<vmem>>, %arg6: memref<32x256xbf16, #tpu.memory_space<vmem>>, %arg7: memref<1x256xf32, #tpu.memory_space<vmem>>, %arg8: memref<16x256xf32, #tpu.memory_space<vmem>>) attributes {dimension_semantics = [#tpu.dimension_semantics<parallel>], iteration_bounds = array<i64: 1>, scalar_prefetch = 0 : i64, scratch_operands = 0 : i64, tpu.core_type = #tpu.core_type<tc>, window_params = [{transform_indices = @transform_0, window_bounds = array<i64: 16, 32>}, {pipeline_mode = #tpu.pipeline_mode<synchronous>, transform_indices = @transform_1, window_bounds = array<i64: 32, 32>}, {pipeline_mode = #tpu.pipeline_mode<synchronous>, transform_indices = @transform_2, window_bounds = array<i64: 1, 32>}, {pipeline_mode = #tpu.pipeline_mode<synchronous>, transform_indices = @transform_3, window_bounds = array<i64: 1, 32>}, {pipeline_mode = #tpu.pipeline_mode<synchronous>, transform_indices = @transform_4, window_bounds = array<i64: 1, 32>}, {pipeline_mode = #tpu.pipeline_mode<synchronous>, transform_indices = @transform_5, window_bounds = array<i64: 32, 256>}, {pipeline_mode = #tpu.pipeline_mode<synchronous>, transform_indices = @transform_6, window_bounds = array<i64: 1, 256>}, {transform_indices = @transform_7, window_bounds = array<i64: 16, 256>}]} {
    %c0 = arith.constant 0 : index
    %c0_0 = arith.constant 0 : index
    %0 = vector.load %arg1[%c0, %c0_0] : memref<16x32xf32, #tpu.memory_space<vmem>>, vector<16x32xf32>
    %1 = arith.truncf %0 : vector<16x32xf32> to vector<16x32xbf16>
    %c0_1 = arith.constant 0 : index
    %c0_2 = arith.constant 0 : index
    %2 = vector.load %arg2[%c0_1, %c0_2] : memref<32x32xbf16, #tpu.memory_space<vmem>>, vector<32x32xbf16>
    %cst = arith.constant dense<0.000000e+00> : vector<16x32xf32>
    %3 = tpu.matmul %1, %2, %cst {dimension_numbers = #tpu.dot_dimension_numbers<[1], [0], [0], [1], [0, 0, 1, 1], [], []>} : vector<16x32xbf16>, vector<32x32xbf16>, vector<16x32xf32> -> vector<16x32xf32>
    %c0_3 = arith.constant 0 : index
    %c0_4 = arith.constant 0 : index
    %4 = vector.load %arg3[%c0_3, %c0_4] : memref<1x32xf32, #tpu.memory_space<vmem>>, vector<1x32xf32>
    %5 = vector.broadcast %4 : vector<1x32xf32> to vector<16x32xf32>
    %6 = arith.addf %3, %5 : vector<16x32xf32>
    %cst_5 = arith.constant 5.000000e-01 : f32
    %7 = vector.broadcast %cst_5 : f32 to vector<16x32xf32>
    %8 = arith.mulf %7, %6 : vector<16x32xf32>
    %cst_6 = arith.constant 0.707106769 : f32
    %9 = vector.broadcast %cst_6 : f32 to vector<16x32xf32>
    %10 = arith.mulf %6, %9 : vector<16x32xf32>
    %11 = math.erf %10 : vector<16x32xf32>
    %cst_7 = arith.constant 1.000000e+00 : f32
    %12 = vector.broadcast %cst_7 : f32 to vector<16x32xf32>
    %13 = arith.addf %12, %11 : vector<16x32xf32>
    %14 = arith.mulf %8, %13 : vector<16x32xf32>
    %cst_8 = arith.constant dense<0.000000e+00> : vector<16xf32>
    %15 = vector.multi_reduction <add>, %14, %cst_8 [1] : vector<16x32xf32> to vector<16xf32>
    %16 = vector.shape_cast %15 : vector<16xf32> to vector<16x1xf32>
    %cst_9 = arith.constant 3.200000e+01 : f32
    %17 = vector.broadcast %cst_9 : f32 to vector<16x1xf32>
    %18 = arith.divf %16, %17 : vector<16x1xf32>
    %19 = vector.broadcast %18 : vector<16x1xf32> to vector<16x32xf32>
    %20 = arith.subf %14, %19 : vector<16x32xf32>
    %21 = arith.mulf %20, %20 : vector<16x32xf32>
    %cst_10 = arith.constant dense<0.000000e+00> : vector<16xf32>
    %22 = vector.multi_reduction <add>, %21, %cst_10 [1] : vector<16x32xf32> to vector<16xf32>
    %23 = vector.shape_cast %22 : vector<16xf32> to vector<16x1xf32>
    %cst_11 = arith.constant 3.200000e+01 : f32
    %24 = vector.broadcast %cst_11 : f32 to vector<16x1xf32>
    %25 = arith.divf %23, %24 : vector<16x1xf32>
    %cst_12 = arith.constant 9.99999974E-6 : f32
    %26 = vector.broadcast %cst_12 : f32 to vector<16x1xf32>
    %27 = arith.addf %25, %26 : vector<16x1xf32>
    %28 = math.rsqrt %27 : vector<16x1xf32>
    %29 = vector.broadcast %28 : vector<16x1xf32> to vector<16x32xf32>
    %30 = arith.mulf %20, %29 : vector<16x32xf32>
    %c0_13 = arith.constant 0 : index
    %c0_14 = arith.constant 0 : index
    %31 = vector.load %arg4[%c0_13, %c0_14] : memref<1x32xf32, #tpu.memory_space<vmem>>, vector<1x32xf32>
    %32 = vector.broadcast %31 : vector<1x32xf32> to vector<16x32xf32>
    %33 = arith.mulf %30, %32 : vector<16x32xf32>
    %c0_15 = arith.constant 0 : index
    %c0_16 = arith.constant 0 : index
    %34 = vector.load %arg5[%c0_15, %c0_16] : memref<1x32xf32, #tpu.memory_space<vmem>>, vector<1x32xf32>
    %35 = vector.broadcast %34 : vector<1x32xf32> to vector<16x32xf32>
    %36 = arith.addf %33, %35 : vector<16x32xf32>
    %37 = arith.truncf %36 : vector<16x32xf32> to vector<16x32xbf16>
    %c0_17 = arith.constant 0 : index
    %c0_18 = arith.constant 0 : index
    %38 = vector.load %arg6[%c0_17, %c0_18] : memref<32x256xbf16, #tpu.memory_space<vmem>>, vector<32x256xbf16>
    %cst_19 = arith.constant dense<0.000000e+00> : vector<16x256xf32>
    %39 = tpu.matmul %37, %38, %cst_19 {dimension_numbers = #tpu.dot_dimension_numbers<[1], [0], [0], [1], [0, 0, 1, 1], [], []>} : vector<16x32xbf16>, vector<32x256xbf16>, vector<16x256xf32> -> vector<16x256xf32>
    %c0_20 = arith.constant 0 : index
    %c0_21 = arith.constant 0 : index
    %40 = vector.load %arg7[%c0_20, %c0_21] : memref<1x256xf32, #tpu.memory_space<vmem>>, vector<1x256xf32>
    %41 = vector.broadcast %40 : vector<1x256xf32> to vector<16x256xf32>
    %42 = arith.addf %39, %41 : vector<16x256xf32>
    %c0_22 = arith.constant 0 : index
    %c0_23 = arith.constant 0 : index
    %43 = vector.load %arg8[%c0_22, %c0_23] : memref<16x256xf32, #tpu.memory_space<vmem>>, vector<16x256xf32>
    tpu.vector_store %arg8[%c0_22, %c0_23], %42 {strides = array<i32>} : memref<16x256xf32, #tpu.memory_space<vmem>>, vector<16x256xf32>,
    return
  }
  func.func @transform_0(%arg0: i32) -> (i32, i32) {
    %c0_i32 = arith.constant 0 : i32
    %c0_i32_0 = arith.constant 0 : i32
    return %arg0, %c0_i32 : i32, i32
  }
  func.func @transform_1(%arg0: i32) -> (i32, i32) {
    %c0_i32 = arith.constant 0 : i32
    %c0_i32_0 = arith.constant 0 : i32
    %c0_i32_1 = arith.constant 0 : i32
    return %c0_i32, %c0_i32_0 : i32, i32
  }
  func.func @transform_2(%arg0: i32) -> (i32, i32) {
    %c0_i32 = arith.constant 0 : i32
    %c0_i32_0 = arith.constant 0 : i32
    %c0_i32_1 = arith.constant 0 : i32
    return %c0_i32, %c0_i32_0 : i32, i32
  }
  func.func @transform_3(%arg0: i32) -> (i32, i32) {
    %c0_i32 = arith.constant 0 : i32
    %c0_i32_0 = arith.constant 0 : i32
    %c0_i32_1 = arith.constant 0 : i32
    return %c0_i32, %c0_i32_0 : i32, i32
  }
  func.func @transform_4(%arg0: i32) -> (i32, i32) {
    %c0_i32 = arith.constant 0 : i32
    %c0_i32_0 = arith.constant 0 : i32
    %c0_i32_1 = arith.constant 0 : i32
    return %c0_i32, %c0_i32_0 : i32, i32
  }
  func.func @transform_5(%arg0: i32) -> (i32, i32) {
    %c0_i32 = arith.constant 0 : i32
    %c0_i32_0 = arith.constant 0 : i32
    %c0_i32_1 = arith.constant 0 : i32
    return %c0_i32, %c0_i32_0 : i32, i32
  }
  func.func @transform_6(%arg0: i32) -> (i32, i32) {
    %c0_i32 = arith.constant 0 : i32
    %c0_i32_0 = arith.constant 0 : i32
    %c0_i32_1 = arith.constant 0 : i32
    return %c0_i32, %c0_i32_0 : i32, i32
  }
  func.func @transform_7(%arg0: i32) -> (i32, i32) {
    %c0_i32 = arith.constant 0 : i32
    %c0_i32_0 = arith.constant 0 : i32
    return %arg0, %c0_i32 : i32, i32
  }
}

</mosaic_0001>

<bundles_post_ra>
// kernel: _head_impl.1
= control target key start
LH: loop header
LB: loop body
LE: loop exit
PB: predicated region body
PF: predicated region fallthrough
CT: control target
= control target key end

     0   :  { %v285_v0 = vmov 0.0   ;;  %vm286_vm0 = vmmov 0   ;;  %vm53_vm1 = vcmask 261120   ;;  %v287_v39 = vmov 0   ;;  %s382_s1 = inlined_call_operand.vmem [shape: bf16[32,32], index: 1, kind: input, shape index: {}]   ;;  %s383_s0 = inlined_call_operand.vmem [shape: f32[16,32], index: 0, kind: input, shape index: {}]   ;;  %s384_s2 = inlined_call_operand.vmem [shape: f32[1,32], index: 2, kind: input, shape index: {}]   ;;  %s385_s5 = inlined_call_operand.vmem [shape: bf16[32,256], index: 5, kind: input, shape index: {}]   ;;  %s386_s3 = inlined_call_operand.vmem [shape: f32[1,32], index: 3, kind: input, shape index: {}]   ;;  %s387_s4 = inlined_call_operand.vmem [shape: f32[1,32], index: 4, kind: input, shape index: {}]   ;;  %s388_s6 = inlined_call_operand.vmem [shape: f32[1,256], index: 6, kind: input, shape index: {}]   ;;  %s389_s7 = inlined_call_operand.vmem [shape: f32[16,256], index: 7, kind: output, shape index: {}]  }
   0x1   :  { %258 = vmatprep.subr.bf16.mxu0 %v285_v0  ;;  %v269_v1 = vld [vmem:[%s382_s1] sm:$0xff]   ;;  %262 = vmatprep.mubr.msk.bf16.mxu0 %vm286_vm0, %v285_v0  ;;  %v270_v2 = vld [vmem:[%s382_s1 + $0x8] sm:$0xff]   ;;  %v274_v37 = vld [vmem:[%s385_s5 + $0x14] ss:$8 sps:$4 sm:$0xff]   ;;  %v160_v57 = vlaneseq }
   0x2   :  { %259 = vmatpush3.bf16.msra.mxu0 %v269_v1  ;;  %v27_v3 = vld [vmem:[%s383_s0] sm:$0xff]  ;;  %v28_v4 = vld [vmem:[%s383_s0 + $0x8] sm:$0xff]  ;;  %v276_v38 = vld [vmem:[%s385_s5 + $0x10] ss:$8 sps:$4 sm:$0xff]   ;;  %225 = vmatprep.mubr.bf16.mxu1 %v287_v39 }
   0x3   :  { %260 = vmatprep.subr.bf16.mxu0 %v285_v0  ;;  %v29_v5 = vpack.c.bf16 %v28_v4, %v27_v3  ;;  %v244_v6 = vld [vmem:[%s384_s2] ss:$0 sm:$0xff]  ;;  %v271_v35 = vld [vmem:[%s385_s5 + $0x4] ss:$8 sps:$4 sm:$0xff]   ;;  %v161_v58 = vshrl.u32 %v160_v57, 7 }
   0x4   :  { %v273_v36 = vld [vmem:[%s385_s5] ss:$8 sps:$4 sm:$0xff]   ;;  %193 = vmatprep.subr.bf16.mxu1 %v271_v35 }
   0x5   :  { %194 = vmatpush1.bf16.msra.mxu1 %v273_v36  ;;  %v248_v48 = vld [vmem:[%s386_s3] ss:$0 sm:$0xff]  ;;  %v162_v59 = vsub.s32 0, %v161_v58  ;;  %v166_v61 = vsub.s32 1, %v161_v58 }
   0x6   :  { %261 = vmatpush3.bf16.msra.mxu0 %v270_v2  ;;  %195 = vmatprep.subr.bf16.mxu1 %v274_v37  ;;  %v249_v52 = vld [vmem:[%s387_s4] ss:$0 sm:$0xff] }
   0x7   :  { %v158_v60 = vld [vmem:[%s388_s6] sm:$0x3] }
   0x8   :  { %v163_v62 = vrot.slane %v158_v60, %v162_v59  ;;  %v167_v63 = vrot.slane %v158_v60, %v166_v61 }
   0x9   :  { %263 = vmatmul.mubr.msk.bf16.vlgmr.msra.gmra.mrb[0].mxu0 %vm53_vm1, %v29_v5  ;;  %196 = vmatpush1.bf16.msra.mxu1 %v276_v38 }
  0xdc   :  { %v91_v7 = vpop.f32.mrb[0].mxu0 }
  0xdd   :  { %v92_v8 = vadd.f32 %v244_v6, %v91_v7  ;;  %v264_v9 = vpop.f32.mrb[1].mxu0 }
  0xde   :  { %v94_v10 = vpop.f32.mrb[2].mxu0 }
  0xdf   :  { %v100_v11 = vmul.f32 0.70710677, %v92_v8  ;;  %v95_v12 = vadd.f32 %v244_v6, %v94_v10  ;;  %v265_v13 = vpop.f32.mrb[3].mxu0  ;;  %v98_v16 = vmul.f32 0.5, %v92_v8 }
  0xe1   :  { %277 = verf.f32 %v100_v11  ;;  %v101_v14 = vmul.f32 0.70710677, %v95_v12  ;;  %v99_v19 = vmul.f32 0.5, %v95_v12 }
  0xe3   :  { %279 = verf.f32 %v101_v14 }
  0xeb   :  { %v278_v15 = vpop.eup %277 }
  0xec   :  { %v104_v17 = vadd.f32 1.0, %v278_v15 }
  0xed   :  { %v280_v18 = vpop.eup %279 }
  0xee   :  { %v106_v20 = vmul.f32 %v104_v17, %v98_v16  ;;  %v105_v21 = vadd.f32 1.0, %v280_v18 }
  0xf0   :  { %v108_v22 = vsel %vm53_vm1, %v106_v20, 0.0  ;;  %v107_v23 = vmul.f32 %v105_v21, %v99_v19 }
  0xf1   :  { %109 = vadd.xlane.f32.xlu0 %v108_v22 }
  0xf2   :  { %v111_v24 = vsel %vm53_vm1, %v107_v23, 0.0 }
  0xf5   :  { %112 = vadd.xlane.f32.xlu0 %v111_v24 }
 0x17e   :  { %v110_v25 = vpop.xlane.xlu0 %109 }
 0x17f   :  { %v115_v26 = vmul.f32 0.03125, %v110_v25 }
 0x181   :  { %v117_v27 = vsub.f32 %v106_v20, %v115_v26 }
 0x182   :  { %v113_v28 = vpop.xlane.xlu0 %112 }
 0x183   :  { %v116_v29 = vmul.f32 0.03125, %v113_v28  ;;  %v119_v30 = vmul.f32 %v117_v27, %v117_v27 }
 0x185   :  { %v118_v31 = vsub.f32 %v107_v23, %v116_v29  ;;  %v121_v32 = vsel %vm53_vm1, %v119_v30, 0.0 }
 0x186   :  { %122 = vadd.xlane.f32.xlu1 %v121_v32 }
 0x187   :  { %v120_v33 = vmul.f32 %v118_v31, %v118_v31 }
 0x189   :  { %v124_v34 = vsel %vm53_vm1, %v120_v33, 0.0 }
 0x18a   :  { %125 = vadd.xlane.f32.xlu1 %v124_v34 }
 0x213   :  { %v123_v40 = vpop.xlane.xlu1 %122 }
 0x214   :  { %v127_v41 = vmul.f32 0.03125, %v123_v40 }
 0x216   :  { %v129_v42 = vadd.f32 1e-05, %v127_v41 }
 0x217   :  { %v126_v43 = vpop.xlane.xlu1 %125 }
 0x218   :  { %281 = vrsqrt.f32 %v129_v42  ;;  %v128_v44 = vmul.f32 0.03125, %v126_v43 }
 0x21a   :  { %v130_v45 = vadd.f32 1e-05, %v128_v44 }
 0x21c   :  { %283 = vrsqrt.f32 %v130_v45 }
 0x222   :  { %v282_v46 = vpop.eup %281 }
 0x223   :  { %v133_v47 = vmul.f32 %v282_v46, %v117_v27 }
 0x225   :  { %v142_v51 = vmul.f32 %v248_v48, %v133_v47 }
 0x226   :  { %v284_v49 = vpop.eup %283 }
 0x227   :  { %v134_v50 = vmul.f32 %v284_v49, %v118_v31  ;;  %v151_v54 = vadd.f32 %v249_v52, %v142_v51 }
 0x229   :  { %v143_v53 = vmul.f32 %v248_v48, %v134_v50 }
 0x22b   :  { %v152_v55 = vadd.f32 %v249_v52, %v143_v53 }
 0x22d   :  { %v153_v56 = vpack.c.bf16 %v152_v55, %v151_v54 }
 0x22f   :  { %254 = vmatmul.mubr.msk.bf16.vlgmr.msra.gmra.mrb[0].mxu1 %vm53_vm1, %v153_v56 }
 0x302   :  { %v227_v0 = vpop.f32.mrb[0].mxu1 }
 0x303   :  { %v228_v1 = vadd.f32 %v227_v0, %v163_v62  ;;  %v229_v2 = vpop.f32.mrb[1].mxu1 }
 0x304   :  { %v230_v3 = vadd.f32 %v229_v2, %v167_v63  ;;  %v231_v4 = vpop.f32.mrb[2].mxu1 }
 0x305   :  { %236 = vst [vmem:[%s389_s7] sm:$0xff] %v228_v1  ;;  %v232_v5 = vadd.f32 %v231_v4, %v163_v62  ;;  %v233_v6 = vpop.f32.mrb[3].mxu1 }
 0x306   :  { %237 = vst [vmem:[%s389_s7 + $0x8] sm:$0xff] %v230_v3  ;;  %v234_v7 = vadd.f32 %v233_v6, %v167_v63 }
 0x307   :  { %238 = vst [vmem:[%s389_s7 + $0x10] sm:$0xff] %v232_v5 }
 0x308   :  { %239 = vst [vmem:[%s389_s7 + $0x18] sm:$0xff] %v234_v7 }

// kernel: _head_impl.1
= control target key start
LH: loop header
LB: loop body
LE: loop exit
PB: predicated region body
PF: predicated region fallthrough
CT: control target
= control target key end

     0   :  { %v285_v0 = vmov 0.0   ;;  %vm286_vm0 = vmmov 0   ;;  %vm53_vm1 = vcmask 261120   ;;  %v287_v39 = vmov 0   ;;  %s382_s1 = inlined_call_operand.vmem [shape: bf16[32,32], index: 1, kind: input, shape index: {}]   ;;  %s383_s0 = inlined_call_operand.vmem [shape: f32[16,32], index: 0, kind: input, shape index: {}]   ;;  %s384_s2 = inlined_call_operand.vmem [shape: f32[1,32], index: 2, kind: input, shape index: {}]   ;;  %s385_s5 = inlined_call_operand.vmem [shape: bf16[32,256], index: 5, kind: input, shape index: {}]   ;;  %s386_s3 = inlined_call_operand.vmem [shape: f32[1,32], index: 3, kind: input, shape index: {}]   ;;  %s387_s4 = inlined_call_operand.vmem [shape: f32[1,32], index: 4, kind: input, shape index: {}]   ;;  %s388_s6 = inlined_call_operand.vmem [shape: f32[1,256], index: 6, kind: input, shape index: {}]   ;;  %s389_s7 = inlined_call_operand.vmem [shape: f32[16,256], index: 7, kind: output, shape index: {}]  }
   0x1   :  { %258 = vmatprep.subr.bf16.mxu0 %v285_v0  ;;  %v269_v1 = vld [vmem:[%s382_s1] sm:$0xff]   ;;  %262 = vmatprep.mubr.msk.bf16.mxu0 %vm286_vm0, %v285_v0  ;;  %v270_v2 = vld [vmem:[%s382_s1 + $0x8] sm:$0xff]   ;;  %v274_v37 = vld [vmem:[%s385_s5 + $0x14] ss:$8 sps:$4 sm:$0xff]   ;;  %v160_v57 = vlaneseq }
   0x2   :  { %259 = vmatpush3.bf16.msra.mxu0 %v269_v1  ;;  %v27_v3 = vld [vmem:[%s383_s0] sm:$0xff]  ;;  %v28_v4 = vld [vmem:[%s383_s0 + $0x8] sm:$0xff]  ;;  %v276_v38 = vld [vmem:[%s385_s5 + $0x10] ss:$8 sps:$4 sm:$0xff]   ;;  %225 = vmatprep.mubr.bf16.mxu1 %v287_v39 }
   0x3   :  { %260 = vmatprep.subr.bf16.mxu0 %v285_v0  ;;  %v29_v5 = vpack.c.bf16 %v28_v4, %v27_v3  ;;  %v244_v6 = vld [vmem:[%s384_s2] ss:$0 sm:$0xff]  ;;  %v271_v35 = vld [vmem:[%s385_s5 + $0x4] ss:$8 sps:$4 sm:$0xff]   ;;  %v161_v58 = vshrl.u32 %v160_v57, 7 }
   0x4   :  { %v273_v36 = vld [vmem:[%s385_s5] ss:$8 sps:$4 sm:$0xff]   ;;  %193 = vmatprep.subr.bf16.mxu1 %v271_v35 }
   0x5   :  { %194 = vmatpush1.bf16.msra.mxu1 %v273_v36  ;;  %v248_v48 = vld [vmem:[%s386_s3] ss:$0 sm:$0xff]  ;;  %v162_v59 = vsub.s32 0, %v161_v58  ;;  %v166_v61 = vsub.s32 1, %v161_v58 }
   0x6   :  { %261 = vmatpush3.bf16.msra.mxu0 %v270_v2  ;;  %195 = vmatprep.subr.bf16.mxu1 %v274_v37  ;;  %v249_v52 = vld [vmem:[%s387_s4] ss:$0 sm:$0xff] }
   0x7   :  { %v158_v60 = vld [vmem:[%s388_s6] sm:$0x3] }
   0x8   :  { %v163_v62 = vrot.slane %v158_v60, %v162_v59  ;;  %v167_v63 = vrot.slane %v158_v60, %v166_v61 }
   0x9   :  { %263 = vmatmul.mubr.msk.bf16.vlgmr.msra.gmra.mrb[0].mxu0 %vm53_vm1, %v29_v5  ;;  %196 = vmatpush1.bf16.msra.mxu1 %v276_v38 }
  0xdc   :  { %v91_v7 = vpop.f32.mrb[0].mxu0 }
  0xdd   :  { %v92_v8 = vadd.f32 %v244_v6, %v91_v7  ;;  %v264_v9 = vpop.f32.mrb[1].mxu0 }
  0xde   :  { %v94_v10 = vpop.f32.mrb[2].mxu0 }
  0xdf   :  { %v100_v11 = vmul.f32 0.70710677, %v92_v8  ;;  %v95_v12 = vadd.f32 %v244_v6, %v94_v10  ;;  %v265_v13 = vpop.f32.mrb[3].mxu0  ;;  %v98_v16 = vmul.f32 0.5, %v92_v8 }
  0xe1   :  { %277 = verf.f32 %v100_v11  ;;  %v101_v14 = vmul.f32 0.70710677, %v95_v12  ;;  %v99_v19 = vmul.f32 0.5, %v95_v12 }
  0xe3   :  { %279 = verf.f32 %v101_v14 }
  0xeb   :  { %v278_v15 = vpop.eup %277 }
  0xec   :  { %v104_v17 = vadd.f32 1.0, %v278_v15 }
  0xed   :  { %v280_v18 = vpop.eup %279 }
  0xee   :  { %v106_v20 = vmul.f32 %v104_v17, %v98_v16  ;;  %v105_v21 = vadd.f32 1.0, %v280_v18 }
  0xf0   :  { %v108_v22 = vsel %vm53_vm1, %v106_v20, 0.0  ;;  %v107_v23 = vmul.f32 %v105_v21, %v99_v19 }
  0xf1   :  { %109 = vadd.xlane.f32.xlu0 %v108_v22 }
  0xf2   :  { %v111_v24 = vsel %vm53_vm1, %v107_v23, 0.0 }
  0xf5   :  { %112 = vadd.xlane.f32.xlu0 %v111_v24 }
 0x17e   :  { %v110_v25 = vpop.xlane.xlu0 %109 }
 0x17f   :  { %v115_v26 = vmul.f32 0.03125, %v110_v25 }
 0x181   :  { %v117_v27 = vsub.f32 %v106_v20, %v115_v26 }
 0x182   :  { %v113_v28 = vpop.xlane.xlu0 %112 }
 0x183   :  { %v116_v29 = vmul.f32 0.03125, %v113_v28  ;;  %v119_v30 = vmul.f32 %v117_v27, %v117_v27 }
 0x185   :  { %v118_v31 = vsub.f32 %v107_v23, %v116_v29  ;;  %v121_v32 = vsel %vm53_vm1, %v119_v30, 0.0 }
 0x186   :  { %122 = vadd.xlane.f32.xlu1 %v121_v32 }
 0x187   :  { %v120_v33 = vmul.f32 %v118_v31, %v118_v31 }
 0x189   :  { %v124_v34 = vsel %vm53_vm1, %v120_v33, 0.0 }
 0x18a   :  { %125 = vadd.xlane.f32.xlu1 %v124_v34 }
 0x213   :  { %v123_v40 = vpop.xlane.xlu1 %122 }
 0x214   :  { %v127_v41 = vmul.f32 0.03125, %v123_v40 }
 0x216   :  { %v129_v42 = vadd.f32 1e-05, %v127_v41 }
 0x217   :  { %v126_v43 = vpop.xlane.xlu1 %125 }
 0x218   :  { %281 = vrsqrt.f32 %v129_v42  ;;  %v128_v44 = vmul.f32 0.03125, %v126_v43 }
 0x21a   :  { %v130_v45 = vadd.f32 1e-05, %v128_v44 }
 0x21c   :  { %283 = vrsqrt.f32 %v130_v45 }
 0x222   :  { %v282_v46 = vpop.eup %281 }
 0x223   :  { %v133_v47 = vmul.f32 %v282_v46, %v117_v27 }
 0x225   :  { %v142_v51 = vmul.f32 %v248_v48, %v133_v47 }
 0x226   :  { %v284_v49 = vpop.eup %283 }
 0x227   :  { %v134_v50 = vmul.f32 %v284_v49, %v118_v31  ;;  %v151_v54 = vadd.f32 %v249_v52, %v142_v51 }
 0x229   :  { %v143_v53 = vmul.f32 %v248_v48, %v134_v50 }
 0x22b   :  { %v152_v55 = vadd.f32 %v249_v52, %v143_v53 }
 0x22d   :  { %v153_v56 = vpack.c.bf16 %v152_v55, %v151_v54 }
 0x22f   :  { %254 = vmatmul.mubr.msk.bf16.vlgmr.msra.gmra.mrb[0].mxu1 %vm53_vm1, %v153_v56 }
 0x302   :  { %v227_v0 = vpop.f32.mrb[0].mxu1 }
 0x303   :  { %v228_v1 = vadd.f32 %v227_v0, %v163_v62  ;;  %v229_v2 = vpop.f32.mrb[1].mxu1 }
 0x304   :  { %v230_v3 = vadd.f32 %v229_v2, %v167_v63  ;;  %v231_v4 = vpop.f32.mrb[2].mxu1 }
 0x305   :  { %236 = vst [vmem:[%s389_s7] sm:$0xff] %v228_v1  ;;  %v232_v5 = vadd.f32 %v231_v4, %v163_v62  ;;  %v233_v6 = vpop.f32.mrb[3].mxu1 }
 0x306   :  { %237 = vst [vmem:[%s389_s7 + $0x8] sm:$0xff] %v230_v3  ;;  %v234_v7 = vadd.f32 %v233_v6, %v167_v63 }
 0x307   :  { %238 = vst [vmem:[%s389_s7 + $0x10] sm:$0xff] %v232_v5 }
 0x308   :  { %239 = vst [vmem:[%s389_s7 + $0x18] sm:$0xff] %v234_v7 }

</bundles_post_ra>
